<compile_context>
chip_gen: v7x
topology: tpu7x:2x2x1
jax: 0.10.0
libtpu: 0.0.40
codegen_flags: <defaults>
</compile_context>

<pallas_src>
import jax
import jax.numpy as jnp
from jax.experimental import pallas as pl
from jax.experimental.pallas import tpu as pltpu

_LANE = 128


def _round_up(v, m):
    return ((v + m - 1) // m) * m


def _vmem_capacity_bytes():
    """Per-TensorCore VMEM capacity; conservative fallback if query fails."""
    try:
        info = pltpu.get_tpu_info()
        cap = getattr(info, "vmem_capacity_bytes", None)
        if cap:
            return int(cap)
    except Exception:
        pass
    return 64 * 1024 * 1024  # v7x per-TC VMEM (smallest of the three gens)


def _divisors_desc(n, cap):
    """Multiples of 128 dividing n, descending, each <= cap (128 always)."""
    out = []
    d = min(cap, n)
    d -= d % _LANE
    while d >= _LANE:
        if n % d == 0:
            out.append(d)
        d -= _LANE
    return out or [_LANE]


# ----------------------------------------------------------------------------
# Fused Pallas kernel: all encoder + decoder layers in one call.
#   grid = (layer, i, k);  per layer:  out = P_enc @ (act @ W_l) + b  (encoder)
#                                      out = 2*xw - P_enc @ xw + b    (decoder)
# ----------------------------------------------------------------------------
def _make_gala_kernel(*, n_enc, tile_m, tk, resident_prop):
    def kernel(prop_ref, x_ref, w_ref, b_ref, xhat_ref, z_ref,
               act_ref, xw_ref, acc_ref, *rest):
        prop_vmem = rest[0] if resident_prop else None
        l = pl.program_id(0)
        i = pl.program_id(1)
        k = pl.program_id(2)
        n_layers = pl.num_programs(0)
        n_k = pl.num_programs(2)

        # One-time staging (very first grid step): seed the activation scratch
        # with the padded input features and, if it fits, park P_enc in VMEM.
        @pl.when(jnp.logical_and(l == 0, jnp.logical_and(i == 0, k == 0)))
        def _():
            pltpu.sync_copy(x_ref, act_ref)
            if resident_prop:
                pltpu.sync_copy(prop_ref, prop_vmem)

        # Layer prologue (first grid step of each layer): xw = act @ W_l, done
        # once for all nodes on the bf16 MXU path and reused by every (i, k).
        @pl.when(jnp.logical_and(i == 0, k == 0))
        def _():
            xw = jnp.dot(act_ref[...].astype(jnp.bfloat16), w_ref[0],
                         preferred_element_type=jnp.float32)
            xw_ref[...] = xw.astype(xw_ref.dtype)

        # Accumulate P_enc[row-tile i, k-slab] @ xw[k-slab] (f32 accumulation).
        koff = pl.multiple_of(k * tk, tk)
        if resident_prop:
            slab = prop_vmem[...]          # resident path uses n_i == n_k == 1
        else:
            slab = prop_ref[...]
        partial = jnp.dot(slab, xw_ref[pl.ds(koff, tk), :],
                          preferred_element_type=jnp.float32)

        @pl.when(k == 0)
        def _():
            acc_ref[...] = partial         # first slab: write, don't zero+add

        @pl.when(k != 0)
        def _():
            acc_ref[...] += partial

        # Row-tile epilogue: bias, decoder Laplacian-sharpening identity,
        # ReLU (except final layer), carry the activation, emit z / x_hat.
        @pl.when(k == n_k - 1)
        def _():
            roff = pl.multiple_of(i * tile_m, tile_m)
            xw_rows = xw_ref[pl.ds(roff, tile_m), :].astype(jnp.float32)
            is_dec = l >= n_enc
            lin = jnp.where(is_dec, 2.0 * xw_rows - acc_ref[...],
                            acc_ref[...]) + b_ref[0]
            is_last = l == n_layers - 1
            act = jnp.where(is_last, lin, jnp.maximum(lin, 0.0))
            act_ref[pl.ds(roff, tile_m), :] = act

            @pl.when(l == n_enc - 1)
            def _():
                z_ref[pl.ds(roff, tile_m), :] = act.astype(z_ref.dtype)

            @pl.when(is_last)
            def _():
                xhat_ref[pl.ds(roff, tile_m), :] = lin.astype(xhat_ref.dtype)

    return kernel


# ----------------------------------------------------------------------------
# Glue: dense GCN propagation matrix from edge_index (plain JAX, small setup)
# ----------------------------------------------------------------------------
def build_propagation_matrix(edge_index, num_nodes):
    """P_enc = D^-1/2 (A + I) D^-1/2  (GCNConv propagation)."""
    src = edge_index[0]
    dst = edge_index[1]
    A = jnp.zeros((num_nodes, num_nodes), jnp.float32)
    A = A.at[dst, src].add(1.0)                       # message src -> dst
    A_hat = A + jnp.eye(num_nodes, dtype=jnp.float32)
    deg = jnp.sum(A_hat, axis=1)
    d_inv_sqrt = jnp.where(deg > 0, 1.0 / jnp.sqrt(deg), 0.0)
    return d_inv_sqrt[:, None] * A_hat * d_inv_sqrt[None, :]


# ----------------------------------------------------------------------------
# Parameters
# ----------------------------------------------------------------------------
def init_gala_params(key, in_channels, hidden_channels, encoder_layers):
    enc_dims = [in_channels] + list(encoder_layers) + [hidden_channels]
    dec_dims = list(reversed(enc_dims))

    def make_layer(k, cin, cout):
        limit = jnp.sqrt(6.0 / (cin + cout))
        w = jax.random.uniform(k, (cin, cout), jnp.float32, -limit, limit)
        b = jnp.zeros((cout,), jnp.float32)
        return (w, b)

    params = {"encoder": [], "decoder": []}
    keys = jax.random.split(key, len(enc_dims) - 1 + len(dec_dims) - 1)
    idx = 0
    for cin, cout in zip(enc_dims[:-1], enc_dims[1:]):
        params["encoder"].append(make_layer(keys[idx], cin, cout))
        idx += 1
    for cin, cout in zip(dec_dims[:-1], dec_dims[1:]):
        params["decoder"].append(make_layer(keys[idx], cin, cout))
        idx += 1
    return params


# ----------------------------------------------------------------------------
# Forward: pad once, run the fused kernel, slice the valid region back out.
# ----------------------------------------------------------------------------
def gala_forward(params, x, edge_index):
    N, c_in = x.shape
    enc = params["encoder"]
    dec = params["decoder"]
    n_enc = len(enc)
    layers = list(enc) + list(dec)
    n_layers = len(layers)
    hidden = enc[-1][0].shape[1]
    c_out = dec[-1][0].shape[1]

    # Lane-dense channel padding (keep 128; the kernel is HBM-bound so wider
    # MXU output would only add FLOPs and bytes).
    dims = [c_in] + [w.shape[1] for (w, _) in layers]
    C_pad = _round_up(max(dims), _LANE)
    N_pad = _round_up(N, _LANE)

    # Single propagation matrix (encoder).  The decoder uses 2I - P_enc via the
    # algebraic identity inside the kernel -> no second (N,N) operand.
    P_enc = build_propagation_matrix(edge_index, N)
    prop = jnp.zeros((N_pad, N_pad), jnp.bfloat16)
    prop = prop.at[:N, :N].set(P_enc.astype(jnp.bfloat16))

    # Stacked bf16 weights / f32 biases, zero-padded to (C_pad, C_pad).
    w_stack = jnp.zeros((n_layers, C_pad, C_pad), jnp.bfloat16)
    b_stack = jnp.zeros((n_layers, 1, C_pad), jnp.float32)
    for idx, (w, b) in enumerate(layers):
        cin, cout = w.shape
        w_stack = w_stack.at[idx, :cin, :cout].set(w.astype(jnp.bfloat16))
        b_stack = b_stack.at[idx, 0, :cout].set(b)

    x_pad = jnp.zeros((N_pad, C_pad), jnp.float32)
    x_pad = x_pad.at[:N, :c_in].set(x.astype(jnp.float32))

    # ------------------ per-generation VMEM budgeting ------------------------
    capacity = _vmem_capacity_bytes()
    usable = min(int(capacity * 0.85), capacity - (8 << 20))
    fixed = (N_pad * C_pad * 4          # act scratch (layer carry)
             + N_pad * C_pad * 2        # xw scratch (bf16)
             + 2 * N_pad * C_pad * 4    # x_hat output (assume double-buffered)
             + 2 * N_pad * C_pad * 4    # z output
             + 2 * C_pad * C_pad * 2    # per-layer weights (double-buffered)
             + 2 * C_pad * 4)           # per-layer bias
    prop_bytes = N_pad * N_pad * 2

    resident_prop = (fixed + prop_bytes + N_pad * C_pad * 4) <= usable
    if resident_prop:
        # P_enc fully resident in VMEM -> single (i, k) tile per layer.
        tile_m = N_pad
        tk = N_pad
        slab_bytes = prop_bytes
    else:
        # 2-D tiled streaming: slab VMEM is O(tile_m * tk), fits v7x's 64 MiB.
        tile_m = _divisors_desc(N_pad, 1024)[0]
        budget = usable - fixed - tile_m * C_pad * 4
        tk = _LANE
        for cand in _divisors_desc(N_pad, 4096):
            if 2 * tile_m * cand * 2 <= budget:
                tk = cand
                break
        slab_bytes = 2 * tile_m * tk * 2

    acc_bytes = tile_m * C_pad * 4
    total = fixed + acc_bytes + slab_bytes
    vmem_limit = int(min(capacity - (4 << 20),
                         max(int(total * 1.3) + (4 << 20), 32 << 20)))

    n_i = N_pad // tile_m
    n_k = N_pad // tk

    kernel = _make_gala_kernel(n_enc=n_enc, tile_m=tile_m, tk=tk,
                               resident_prop=resident_prop)

    if resident_prop:
        prop_spec = pl.BlockSpec(memory_space=pl.ANY)   # copied once to VMEM
        extra_scratch = [pltpu.VMEM((N_pad, N_pad), jnp.bfloat16)]
    else:
        prop_spec = pl.BlockSpec((tile_m, tk), lambda l, i, k: (i, k))
        extra_scratch = []

    x_hat_pad, z_pad = pl.pallas_call(
        kernel,
        out_shape=(
            jax.ShapeDtypeStruct((N_pad, C_pad), jnp.float32),   # x_hat
            jax.ShapeDtypeStruct((N_pad, C_pad), jnp.float32),   # z
        ),
        grid_spec=pltpu.PrefetchScalarGridSpec(
            num_scalar_prefetch=0,
            grid=(n_layers, n_i, n_k),
            in_specs=[
                prop_spec,                                        # P_enc
                pl.BlockSpec(memory_space=pl.ANY),                # x (one copy)
                pl.BlockSpec((1, C_pad, C_pad), lambda l, i, k: (l, 0, 0)),
                pl.BlockSpec((1, 1, C_pad), lambda l, i, k: (l, 0, 0)),
            ],
            out_specs=(
                pl.BlockSpec((N_pad, C_pad), lambda l, i, k: (0, 0)),
                pl.BlockSpec((N_pad, C_pad), lambda l, i, k: (0, 0)),
            ),
            scratch_shapes=[
                pltpu.VMEM((N_pad, C_pad), jnp.float32),    # act (layer carry)
                pltpu.VMEM((N_pad, C_pad), jnp.bfloat16),   # xw = act @ W_l
                pltpu.VMEM((tile_m, C_pad), jnp.float32),   # f32 accumulator
            ] + extra_scratch,
        ),
        compiler_params=pltpu.CompilerParams(
            dimension_semantics=("arbitrary", "arbitrary", "arbitrary"),
            vmem_limit_bytes=vmem_limit,
        ),
    )(prop, x_pad, w_stack, b_stack)

    return x_hat_pad[:N, :c_out], z_pad[:N, :hidden]


# ----------------------------------------------------------------------------
# Pure-JAX reference (loose numerical sanity check)
# ----------------------------------------------------------------------------
def _reference_forward(params, x, edge_index):
    N = x.shape[0]
    P_enc = build_propagation_matrix(edge_index, N)
    P_dec = 2.0 * jnp.eye(N, dtype=jnp.float32) - P_enc
    z = x
    for w, b in params["encoder"]:
        z = jnp.maximum(P_enc @ (z @ w) + b, 0.0)
    h = z
    for w, b in params["decoder"][:-1]:
        h = jnp.maximum(P_dec @ (h @ w) + b, 0.0)
    w, b = params["decoder"][-1]
    x_hat = P_dec @ (h @ w) + b
    return x_hat, z


# ----------------------------------------------------------------------------
# Example run
# ----------------------------------------------------------------------------
if __name__ == "__main__":
    key = jax.random.PRNGKey(0)
    k_x, k_p = jax.random.split(key)

    # small synthetic graph: 16 nodes, ring topology (both edge directions)
    N = 16
    in_channels = 4
    hidden_channels = 8
    encoder_layers = [16, 8]

    src = jnp.arange(N, dtype=jnp.int32)
    dst = (src + 1) % N
    edge_index = jnp.stack(
        [jnp.concatenate([src, dst]), jnp.concatenate([dst, src])], axis=0
    )  # [2, 2N]

    x = jax.random.normal(k_x, (N, in_channels), jnp.float32)
    params = init_gala_params(k_p, in_channels, hidden_channels, encoder_layers)

    x_hat, z = gala_forward(params, x, edge_index)
    jax.block_until_ready((x_hat, z))

    assert x_hat.shape == (N, in_channels)
    assert z.shape == (N, hidden_channels)

    # loose tolerance: the kernel runs P_enc / xw / W in bf16 (f32 accumulate)
    x_hat_expect, z_expect = _reference_forward(params, x, edge_index)
    assert bool(jnp.allclose(z, z_expect, rtol=1e-1, atol=1e-1))
    assert bool(jnp.allclose(x_hat, x_hat_expect, rtol=1e-1, atol=1e-1))

    print("KERNEL_OK")
</pallas_src>

<mosaic_0001>
module attributes {stable_mosaic.version = 11 : i64} {
  func.func @kernel(%arg0: i32, %arg1: i32, %arg2: i32, %arg3: memref<128x128xbf16, #tpu.memory_space<any>>, %arg4: memref<128x128xf32, #tpu.memory_space<any>>, %arg5: memref<1x128x128xbf16, #tpu.memory_space<vmem>>, %arg6: memref<1x1x128xf32, #tpu.memory_space<vmem>>, %arg7: memref<128x128xf32, #tpu.memory_space<vmem>>, %arg8: memref<128x128xf32, #tpu.memory_space<vmem>>, %arg9: memref<128x128xf32, #tpu.memory_space<vmem>>, %arg10: memref<128x128xbf16, #tpu.memory_space<vmem>>, %arg11: memref<128x128xf32, #tpu.memory_space<vmem>>, %arg12: memref<128x128xbf16, #tpu.memory_space<vmem>>) attributes {dimension_semantics = [#tpu.dimension_semantics<arbitrary>, #tpu.dimension_semantics<arbitrary>, #tpu.dimension_semantics<arbitrary>], iteration_bounds = array<i64: 6, 1, 1>, scalar_prefetch = 0 : i64, scratch_operands = 4 : i64, tpu.core_type = #tpu.core_type<tc>, window_params = [{}, {}, {transform_indices = @transform_2, window_bounds = array<i64: 1, 128, 128>}, {transform_indices = @transform_3, window_bounds = array<i64: 1, 1, 128>}, {pipeline_mode = #tpu.pipeline_mode<synchronous>, transform_indices = @transform_4, window_bounds = array<i64: 128, 128>}, {pipeline_mode = #tpu.pipeline_mode<synchronous>, transform_indices = @transform_5, window_bounds = array<i64: 128, 128>}]} {
    %c0_i32 = arith.constant 0 : i32
    %0 = arith.cmpi eq, %arg0, %c0_i32 : i32
    %c0_i32_0 = arith.constant 0 : i32
    %1 = arith.cmpi eq, %arg1, %c0_i32_0 : i32
    %c0_i32_1 = arith.constant 0 : i32
    %2 = arith.cmpi eq, %arg2, %c0_i32_1 : i32
    %3 = arith.andi %1, %2 : i1
    %4 = arith.andi %0, %3 : i1
    %5 = arith.extui %4 : i1 to i32
    %c0_i32_2 = arith.constant 0 : i32
    %6 = arith.cmpi ne, %5, %c0_i32_2 : i32
    scf.if %6 {
      "tpu.region"() ({
        %27 = tpu.sem_alloc : memref<!tpu.dma_semaphore, #tpu.memory_space<semaphore_mem>>
        tpu.enqueue_dma source(%arg4 : memref<128x128xf32, #tpu.memory_space<any>>) target(%arg9 : memref<128x128xf32, #tpu.memory_space<vmem>>) target_semaphore(%27 : memref<!tpu.dma_semaphore, #tpu.memory_space<semaphore_mem>>)
        tpu.wait_dma2 semaphore(%27 : memref<!tpu.dma_semaphore, #tpu.memory_space<semaphore_mem>>) src(%arg4 : memref<128x128xf32, #tpu.memory_space<any>>) dst(%arg9 : memref<128x128xf32, #tpu.memory_space<vmem>>)
        tpu.yield
      }) : () -> ()
      "tpu.region"() ({
        %27 = tpu.sem_alloc : memref<!tpu.dma_semaphore, #tpu.memory_space<semaphore_mem>>
        tpu.enqueue_dma source(%arg3 : memref<128x128xbf16, #tpu.memory_space<any>>) target(%arg12 : memref<128x128xbf16, #tpu.memory_space<vmem>>) target_semaphore(%27 : memref<!tpu.dma_semaphore, #tpu.memory_space<semaphore_mem>>)
        tpu.wait_dma2 semaphore(%27 : memref<!tpu.dma_semaphore, #tpu.memory_space<semaphore_mem>>) src(%arg3 : memref<128x128xbf16, #tpu.memory_space<any>>) dst(%arg12 : memref<128x128xbf16, #tpu.memory_space<vmem>>)
        tpu.yield
      }) : () -> ()
    } else {
    }
    %c0_i32_3 = arith.constant 0 : i32
    %7 = arith.cmpi eq, %arg1, %c0_i32_3 : i32
    %c0_i32_4 = arith.constant 0 : i32
    %8 = arith.cmpi eq, %arg2, %c0_i32_4 : i32
    %9 = arith.andi %7, %8 : i1
    %10 = arith.extui %9 : i1 to i32
    %c0_i32_5 = arith.constant 0 : i32
    %11 = arith.cmpi ne, %10, %c0_i32_5 : i32
    scf.if %11 {
      %c0_14 = arith.constant 0 : index
      %c0_15 = arith.constant 0 : index
      %27 = vector.load %arg9[%c0_14, %c0_15] : memref<128x128xf32, #tpu.memory_space<vmem>>, vector<128x128xf32>
      %28 = arith.truncf %27 : vector<128x128xf32> to vector<128x128xbf16>
      %c0_16 = arith.constant 0 : index
      %c0_17 = arith.constant 0 : index
      %c0_18 = arith.constant 0 : index
      %29 = vector.load %arg5[%c0_16, %c0_17, %c0_18] : memref<1x128x128xbf16, #tpu.memory_space<vmem>>, vector<1x128x128xbf16>
      %30 = vector.shape_cast %29 : vector<1x128x128xbf16> to vector<128x128xbf16>
      %cst_19 = arith.constant dense<0.000000e+00> : vector<128x128xf32>
      %31 = tpu.matmul %28, %30, %cst_19 {dimension_numbers = #tpu.dot_dimension_numbers<[1], [0], [0], [1], [0, 0, 1, 1], [], []>} : vector<128x128xbf16>, vector<128x128xbf16>, vector<128x128xf32> -> vector<128x128xf32>
      %32 = arith.truncf %31 : vector<128x128xf32> to vector<128x128xbf16>
      %c0_20 = arith.constant 0 : index
      %c0_21 = arith.constant 0 : index
      %33 = vector.load %arg10[%c0_20, %c0_21] : memref<128x128xbf16, #tpu.memory_space<vmem>>, vector<128x128xbf16>
      tpu.vector_store %arg10[%c0_20, %c0_21], %32 {strides = array<i32>} : memref<128x128xbf16, #tpu.memory_space<vmem>>, vector<128x128xbf16>,
    } else {
    }
    %c128_i32 = arith.constant 128 : i32
    %12 = arith.muli %arg2, %c128_i32 : i32
    %13 = tpu.assume_multiple %12, 128 : i32
    %c0 = arith.constant 0 : index
    %c0_6 = arith.constant 0 : index
    %14 = vector.load %arg12[%c0, %c0_6] : memref<128x128xbf16, #tpu.memory_space<vmem>>, vector<128x128xbf16>
    %15 = arith.index_cast %13 : i32 to index
    %c0_7 = arith.constant 0 : index
    %16 = vector.load %arg10[%15, %c0_7] : memref<128x128xbf16, #tpu.memory_space<vmem>>, vector<128x128xbf16>
    %cst = arith.constant dense<0.000000e+00> : vector<128x128xf32>
    %17 = tpu.matmul %14, %16, %cst {dimension_numbers = #tpu.dot_dimension_numbers<[1], [0], [0], [1], [0, 0, 1, 1], [], []>} : vector<128x128xbf16>, vector<128x128xbf16>, vector<128x128xf32> -> vector<128x128xf32>
    %c0_i32_8 = arith.constant 0 : i32
    %18 = arith.cmpi eq, %arg2, %c0_i32_8 : i32
    %19 = arith.extui %18 : i1 to i32
    %c0_i32_9 = arith.constant 0 : i32
    %20 = arith.cmpi ne, %19, %c0_i32_9 : i32
    scf.if %20 {
      %c0_14 = arith.constant 0 : index
      %c0_15 = arith.constant 0 : index
      %27 = vector.load %arg11[%c0_14, %c0_15] : memref<128x128xf32, #tpu.memory_space<vmem>>, vector<128x128xf32>
      tpu.vector_store %arg11[%c0_14, %c0_15], %17 {strides = array<i32>} : memref<128x128xf32, #tpu.memory_space<vmem>>, vector<128x128xf32>,
    } else {
    }
    %c0_i32_10 = arith.constant 0 : i32
    %21 = arith.cmpi ne, %arg2, %c0_i32_10 : i32
    %22 = arith.extui %21 : i1 to i32
    %c0_i32_11 = arith.constant 0 : i32
    %23 = arith.cmpi ne, %22, %c0_i32_11 : i32
    scf.if %23 {
      %c0_14 = arith.constant 0 : index
      %c0_15 = arith.constant 0 : index
      %27 = vector.load %arg11[%c0_14, %c0_15] : memref<128x128xf32, #tpu.memory_space<vmem>>, vector<128x128xf32>
      %28 = arith.addf %27, %17 : vector<128x128xf32>
      %c0_16 = arith.constant 0 : index
      %c0_17 = arith.constant 0 : index
      %29 = vector.load %arg11[%c0_16, %c0_17] : memref<128x128xf32, #tpu.memory_space<vmem>>, vector<128x128xf32>
      tpu.vector_store %arg11[%c0_16, %c0_17], %28 {strides = array<i32>} : memref<128x128xf32, #tpu.memory_space<vmem>>, vector<128x128xf32>,
    } else {
    }
    %c0_i32_12 = arith.constant 0 : i32
    %24 = arith.cmpi eq, %arg2, %c0_i32_12 : i32
    %25 = arith.extui %24 : i1 to i32
    %c0_i32_13 = arith.constant 0 : i32
    %26 = arith.cmpi ne, %25, %c0_i32_13 : i32
    scf.if %26 {
      %c128_i32_14 = arith.constant 128 : i32
      %27 = arith.muli %arg1, %c128_i32_14 : i32
      %28 = tpu.assume_multiple %27, 128 : i32
      %29 = arith.index_cast %28 : i32 to index
      %c0_15 = arith.constant 0 : index
      %30 = vector.load %arg10[%29, %c0_15] : memref<128x128xbf16, #tpu.memory_space<vmem>>, vector<128x128xbf16>
      %31 = arith.extf %30 : vector<128x128xbf16> to vector<128x128xf32>
      %c3_i32 = arith.constant 3 : i32
      %32 = arith.cmpi sge, %arg0, %c3_i32 : i32
      %cst_16 = arith.constant 2.000000e+00 : f32
      %33 = vector.broadcast %cst_16 : f32 to vector<128x128xf32>
      %34 = arith.mulf %33, %31 : vector<128x128xf32>
      %c0_17 = arith.constant 0 : index
      %c0_18 = arith.constant 0 : index
      %35 = vector.load %arg11[%c0_17, %c0_18] : memref<128x128xf32, #tpu.memory_space<vmem>>, vector<128x128xf32>
      %36 = arith.subf %34, %35 : vector<128x128xf32>
      %c0_19 = arith.constant 0 : index
      %c0_20 = arith.constant 0 : index
      %37 = vector.load %arg11[%c0_19, %c0_20] : memref<128x128xf32, #tpu.memory_space<vmem>>, vector<128x128xf32>
      %38 = arith.select %32, %36, %37 : vector<128x128xf32>
      %c0_21 = arith.constant 0 : index
      %c0_22 = arith.constant 0 : index
      %c0_23 = arith.constant 0 : index
      %39 = vector.load %arg6[%c0_21, %c0_22, %c0_23] : memref<1x1x128xf32, #tpu.memory_space<vmem>>, vector<1x1x128xf32>
      %40 = vector.shape_cast %39 : vector<1x1x128xf32> to vector<1x128xf32>
      %41 = vector.broadcast %40 : vector<1x128xf32> to vector<128x128xf32>
      %42 = arith.addf %38, %41 : vector<128x128xf32>
      %c5_i32 = arith.constant 5 : i32
      %43 = arith.cmpi eq, %arg0, %c5_i32 : i32
      %cst_24 = arith.constant 0.000000e+00 : f32
      %44 = vector.broadcast %cst_24 : f32 to vector<128x128xf32>
      %45 = arith.maximumf %42, %44 : vector<128x128xf32>
      %46 = arith.select %43, %42, %45 : vector<128x128xf32>
      %47 = arith.index_cast %28 : i32 to index
      %c0_25 = arith.constant 0 : index
      %48 = vector.load %arg9[%47, %c0_25] : memref<128x128xf32, #tpu.memory_space<vmem>>, vector<128x128xf32>
      tpu.vector_store %arg9[%47, %c0_25], %46 {strides = array<i32>} : memref<128x128xf32, #tpu.memory_space<vmem>>, vector<128x128xf32>,
      %c2_i32 = arith.constant 2 : i32
      %49 = arith.cmpi eq, %arg0, %c2_i32 : i32
      %50 = arith.extui %49 : i1 to i32
      %c0_i32_26 = arith.constant 0 : i32
      %51 = arith.cmpi ne, %50, %c0_i32_26 : i32
      scf.if %51 {
        %54 = arith.index_cast %28 : i32 to index
        %c0_28 = arith.constant 0 : index
        %55 = vector.load %arg8[%54, %c0_28] : memref<128x128xf32, #tpu.memory_space<vmem>>, vector<128x128xf32>
        tpu.vector_store %arg8[%54, %c0_28], %46 {strides = array<i32>} : memref<128x128xf32, #tpu.memory_space<vmem>>, vector<128x128xf32>,
      } else {
      }
      %52 = arith.extui %43 : i1 to i32
      %c0_i32_27 = arith.constant 0 : i32
      %53 = arith.cmpi ne, %52, %c0_i32_27 : i32
      scf.if %53 {
        %54 = arith.index_cast %28 : i32 to index
        %c0_28 = arith.constant 0 : index
        %55 = vector.load %arg7[%54, %c0_28] : memref<128x128xf32, #tpu.memory_space<vmem>>, vector<128x128xf32>
        tpu.vector_store %arg7[%54, %c0_28], %42 {strides = array<i32>} : memref<128x128xf32, #tpu.memory_space<vmem>>, vector<128x128xf32>,
      } else {
      }
    } else {
    }
    return
  }
  func.func @transform_2(%arg0: i32, %arg1: i32, %arg2: i32) -> (i32, i32, i32) {
    %c0_i32 = arith.constant 0 : i32
    %c0_i32_0 = arith.constant 0 : i32
    %c0_i32_1 = arith.constant 0 : i32
    return %arg0, %c0_i32, %c0_i32_0 : i32, i32, i32
  }
  func.func @transform_3(%arg0: i32, %arg1: i32, %arg2: i32) -> (i32, i32, i32) {
    %c0_i32 = arith.constant 0 : i32
    %c0_i32_0 = arith.constant 0 : i32
    %c0_i32_1 = arith.constant 0 : i32
    return %arg0, %c0_i32, %c0_i32_0 : i32, i32, i32
  }
  func.func @transform_4(%arg0: i32, %arg1: i32, %arg2: i32) -> (i32, i32) {
    %c0_i32 = arith.constant 0 : i32
    %c0_i32_0 = arith.constant 0 : i32
    %c0_i32_1 = arith.constant 0 : i32
    return %c0_i32, %c0_i32_0 : i32, i32
  }
  func.func @transform_5(%arg0: i32, %arg1: i32, %arg2: i32) -> (i32, i32) {
    %c0_i32 = arith.constant 0 : i32
    %c0_i32_0 = arith.constant 0 : i32
    %c0_i32_1 = arith.constant 0 : i32
    return %c0_i32, %c0_i32_0 : i32, i32
  }
}

</mosaic_0001>

<bundles_post_ra>
// kernel: tpu_custom_call.1
= control target key start
LH: loop header
LB: loop body
LE: loop exit
PB: predicated region body
PF: predicated region fallthrough
CT: control target
= control target key end

     0   :  { %11 = vsyncpa [#allocation7], 0  ;;  %s1862_s0 = inlined_call_operand.hbm [shape: bf16[128,128], index: 0, kind: input, shape index: {}]   ;;  %s1863_s1 = inlined_call_operand.hbm [shape: f32[128,128], index: 1, kind: input, shape index: {}]   ;;  %s1864_s2 = inlined_call_operand.hbm [shape: bf16[6,128,128], index: 2, kind: input, shape index: {}]   ;;  %s1865_s3 = inlined_call_operand.vmem [shape: f32[6,1,128], index: 3, kind: input, shape index: {}]   ;;  %s1866_s4 = inlined_call_operand.hbm [shape: f32[128,128], index: 4, kind: output, shape index: {0}]   ;;  %s1867_s5 = inlined_call_operand.hbm [shape: f32[128,128], index: 5, kind: output, shape index: {1}]  }
   0x1   :  { %13 = vsyncpa [#allocation7 + $0x1], 0 }
   0x2   :  { %14 = vsyncpa [#allocation8], 0 }
   0x3   :  { %15 = vsyncpa [#allocation11], 0  ;;  %s1409_s18 = smov 0   ;;  %s1411_s19 = smov 0  }
   0x4   :  { %s1413_s20 = smov 0   ;;  %s1415_s21 = smov 0  }
   0x5   :  { %s1417_s22 = smov 0   ;;  %s1419_s23 = smov 0  }
   0x6 LB: > { %s973_s24 = sadd.s32 4294967295, %s1368_s23   ;;  %s40_s25 = sadd.s32 1, %s1364_s22  ;;  %s1368_s23 = sphi %s1419_s23, %s21_s23   ;;  %s1364_s22 = sphi %s1417_s22, %s1880_s22   ;;  %s1360_s21 = sphi %s1415_s21, %s1879_s21   ;;  %s1356_s20 = sphi %s1413_s20, %s1878_s20   ;;  %s1352_s19 = sphi %s1411_s19, %s1877_s19   ;;  %s1348_s18 = sphi %s1409_s18, %s1876_s18  }
   0x7   : > { %p42_p0 = scmp.ge.s32.totalorder %s40_s25, 6  ;;  %s47_s26 = sadd.s32 1, %s1356_s20 }
   0x8   : > { %p54_p1 = scmp.ne.s32.totalorder %s1356_s20, %s1352_s19  ;;  %p55_p2 = scmp.eq.s32.totalorder %s1368_s23, 0 }
   0x9   : > { %s1882_s25 = smov (%p42_p0, %s40_s25), 0  ;;  %p60_p4 = scmp.ne.s32.totalorder %s1352_s19, %s1348_s18 }
   0xa   : > { %p1445_p3 = por %p55_p2, %p54_p1  ;;  %s44_s28 = ssub.s32 %s1364_s22, %s1882_s25 }
   0xb   : > { %p61_p5 = scmp.eq.s32.totalorder %s973_s24, 0  ;;  %p45_p6 = scmp.eq.s32.totalorder %s44_s28, 0 }
   0xc   : > { %p1111_p8 = scmp.lt.s32.totalorder %s1368_s23, 6  ;;  %s152_s6 = sand.u32 1, %s1356_s20  }
   0xd   : > { %p1454_p7 = por %p61_p5, %p60_p4  ;;  %s999_s7 = sshll.u32 %s1364_s22, 10 }
   0xe   : > { %s1460_s30 = scalar_select %p45_p6, %s1356_s20, %s47_s26  }
   0xf   : > { %s976_s8 = sshll.u32 %s152_s6, 6  ;;  %s1467_s11 = scalar_lea.hbm %s1864_s2, %s999_s7 }
  0x10   : > { %s156_s12 = scalar_lea.vmem [#allocation6], %s976_s8  ;;  %p1471_p9 = pnand %p1111_p8, %p1445_p3 }
  0x11   : > { %s163_s13 = sshll.u32 %s156_s12, 4  ;;  %s1477_s15 = scalar_lea.sflag [#allocation7], %s152_s6  ;;  %s1475_s13 = int_to_ptr.vmem [resolvable:$true] %s163_s13 }
  0x12   : > { %s1180_s16 = scalar_lea.hbm %s1467_s11, 1024  ;;  %p1182_p11 = pneg %p1471_p9 }
  0x13   : > { %p1181_p10 = scmp.ne.s32.totalorder %s1467_s11, %s1180_s16  ;;  %s1185_s26 = scalar_lea.hbm %s1864_s2, 6144 }
  0x14   : > { %p1186_p0 = scmp.lt.u32.totalorder %s1467_s11, %s1864_s2  ;;  %p1187_p1 = scmp.lt.u32.totalorder %s1185_s26, %s1180_s16 }
  0x15   : > { %p1183_p12 = pnand %p1182_p11, %p1181_p10  ;;  %p1189_p3 = scmp.lt.u32.totalorder %s1180_s16, %s1467_s11 }
  0x16   : > { %p1188_p2 = por %p1187_p1, %p1186_p0 }
  0x17   : > { %p1184_p13 = pneg %p1183_p12 }
  0x18   : > { %p1190_p4 = por %p1189_p3, %p1188_p2 }
  0x1a   : > { %p1191_p5 = pnand %p1190_p4, %p1184_p13 }
  0x1c   : > { %1194 = shalt.err (!%p1191_p5)
}
  0x1d   : > { %s1195_s6 = scalar_lea.vmem %s1475_s13, 1024  ;;  %s1370_s7 = smov [#allocation6]  }
  0x1e   : > { %p1196_p6 = scmp.ne.s32.totalorder %s1475_s13, %s1195_s6  ;;  %s1200_s8 = sshll.u32 %s1370_s7, 4  ;;  %s1201_s8 = int_to_ptr.vmem [resolvable:$false] %s1200_s8 }
  0x1f   : > { %s1202_s9 = scalar_lea.vmem %s1201_s8, 2048  ;;  %p1203_p12 = scmp.lt.s32.totalorder %s1475_s13, %s1201_s8 }
  0x20   : > { %p1198_p8 = pnand %p1196_p6, %p1182_p11  ;;  %p1204_p0 = scmp.lt.s32.totalorder %s1202_s9, %s1195_s6 }
  0x22   : > { %p1199_p10 = pneg %p1198_p8  ;;  %p1205_p1 = por %p1204_p0, %p1203_p12 }
  0x24   : > { %p1206_p2 = pnand %p1205_p1, %p1199_p10 }
  0x26   : > { %1209 = shalt.err (!%p1206_p2)
}
  0x27   : > { %s1371_s10 = smov 64   ;;  %s1372_s12 = smov 4  }
  0x28   : > { %1110 = dma.hbm_to_vmem [thread:$0]  (!%p1471_p9), %s1467_s11, 1024, %s1475_s13, %s1477_s15, %s1371_s10, %s1371_s10, %s1372_s12  }
  0x29   : > { %p979_p11 = scmp.ge.s32.totalorder %s1368_s23, 1  ;;  %p177_p13 = scmp.lt.s32.totalorder %s1368_s23, 7 }
  0x2b   : > { %p178_p3 = pnand %p979_p11, %p177_p13 }
  0x2c   : > { %s183_s16 = sand.u32 (!%p178_p3), 1, %s1352_s19  }
  0x2d   : > { %181 = sbr.rel (%p178_p3) target bundleno = 689 (0x2b1), region = 28  ;;  %s980_s17 = sshll.u32 (!%p178_p3), %s183_s16, 6 }
  0x2e   : > { %s184_s18 = scalar_lea.sflag (!%p178_p3), [#allocation7], %s183_s16  ;;  %s1508_s26 = scalar_lea.vmem (!%p178_p3), [#allocation6], %s980_s17 }
  0x34   : > { %1331 = dma.done.wait (%p1454_p7), %s184_s18, 1024  }
  0x35   : > { %1333 = vsyncadd (%p1454_p7), %s184_s18, 4294966272  ;;  %p208_p9 = scmp.lt.s32.totalorder %s1360_s21, 5  ;;  %p212_p4 = scmp.eq.s32.totalorder %s1360_s21, 0 }
  0x37   : > { %s1517_s11 = scalar_select %p208_p9, %s1360_s21, 5 }
  0x38   : > { %220 = sbr.rel (!%p212_p4) target bundleno = 99 (0x63), region = 36 }
  0x39   : > { %s210_s15 = scalar_lea.vmem %s1865_s3, %s1517_s11 }
  0x3f   : > { %s1373_s27 = smov [#allocation2]   ;;  %s1210_s29 = scalar_lea.hbm %s1863_s1, 2048 }
  0x40   : > { %s228_s28 = sshll.u32 %s1373_s27, 4  ;;  %p1211_p7 = scmp.ne.s32.totalorder %s1863_s1, %s1210_s29  ;;  %s229_s28 = int_to_ptr.vmem [resolvable:$true] %s228_s28 }
  0x41   : > { %p1214_p5 = scmp.lt.u32.totalorder %s1210_s29, %s1863_s1 }
  0x43   : > { %p1216_p6 = pnand %p1214_p5, %p1211_p7 }
  0x45   : > { %1219 = shalt.err (!%p1216_p6)  }
  0x46   : > { %s1220_s16 = scalar_lea.vmem %s229_s28, 2048  ;;  %p1225_p10 = scmp.lt.s32.totalorder %s229_s28, %s229_s28 }
  0x47   : > { %p1221_p8 = scmp.ne.s32.totalorder %s229_s28, %s1220_s16  ;;  %p1226_p12 = scmp.lt.s32.totalorder %s1220_s16, %s1220_s16 }
  0x49   : > { %p1227_p0 = por %p1226_p12, %p1225_p10 }
  0x4b   : > { %p1228_p1 = pnand %p1227_p0, %p1221_p8 }
  0x4d   : > { %1231 = shalt.err (!%p1228_p1)  }
  0x4e   : > { %231 = dma.hbm_to_vmem [thread:$0]  %s1863_s1, 2048, %s229_s28, [#allocation12] }
  0x4f   : > { %1334 = dma.done.wait [#allocation12], 2048 }
  0x50   : > { %1335 = vsyncadd [#allocation12], 4294965248 }
  0x51   : > { %s1374_s13 = smov [#allocation5]   ;;  %s1232_s7 = scalar_lea.hbm %s1862_s0, 1024 }
  0x52   : > { %s242_s14 = sshll.u32 %s1374_s13, 4  ;;  %p1233_p2 = scmp.ne.s32.totalorder %s1862_s0, %s1232_s7  ;;  %s243_s14 = int_to_ptr.vmem [resolvable:$true] %s242_s14 }
  0x53   : > { %p1236_p11 = scmp.lt.u32.totalorder %s1232_s7, %s1862_s0 }
  0x55   : > { %p1238_p13 = pnand %p1236_p11, %p1233_p2 }
  0x57   : > { %1241 = shalt.err (!%p1238_p13)  }
  0x58   : > { %s1242_s28 = scalar_lea.vmem %s243_s14, 1024  ;;  %p1247_p9 = scmp.lt.s32.totalorder %s243_s14, %s243_s14 }
  0x59   : > { %p1243_p3 = scmp.ne.s32.totalorder %s243_s14, %s1242_s28  ;;  %p1248_p4 = scmp.lt.s32.totalorder %s1242_s28, %s1242_s28 }
  0x5b   : > { %p1249_p7 = por %p1248_p4, %p1247_p9 }
  0x5d   : > { %p1250_p5 = pnand %p1249_p7, %p1243_p3 }
  0x5f   : > { %1253 = shalt.err (!%p1250_p5)  }
  0x60   : > { %245 = dma.hbm_to_vmem [thread:$0]  %s1862_s0, 1024, %s243_s14, [#allocation17] }
  0x61   : > { %1336 = dma.done.wait [#allocation17], 1024 }
  0x62   : > { %1337 = vsyncadd [#allocation17], 4294966272 }
  0x63 PF: > { %v1172_v0 = vld [vmem:[%s1508_s26] sm:$0xff]   ;;  %v1173_v1 = vld [vmem:[%s1508_s26 + $0x8] sm:$0xff]   ;;  %v1174_v2 = vld [vmem:[%s1508_s26 + $0x10] sm:$0xff]   ;;  %p674_p6 = scmp.ge.s32.totalorder %s1360_s21, 3  ;;  %p765_p8 = scmp.eq.s32.totalorder %s1360_s21, 5 }
  0x64   : > { %1033 = vmatprep.subr.bf16.mxu0 %v1172_v0  ;;  %v1175_v3 = vld [vmem:[%s1508_s26 + $0x18] sm:$0xff]   ;;  %v252_v4 = vld [vmem:[#allocation2] sm:$0xff]  ;;  %v253_v5 = vld [vmem:[#allocation2 + $0x8] sm:$0xff]  ;;  %p991_p10 = scmp.ne.s32.totalorder %s1360_s21, 2 }
  0x65   : > { %1034 = vmatpush3.bf16.msra.mxu0 %v1172_v0  ;;  %v268_v6 = vpack.c.bf16 %v253_v5, %v252_v4  ;;  %v1176_v7 = vld [vmem:[%s1508_s26 + $0x20] sm:$0xff]   ;;  %v1177_v8 = vld [vmem:[%s1508_s26 + $0x28] sm:$0xff]   ;;  %v1178_v9 = vld [vmem:[%s1508_s26 + $0x30] sm:$0xff]   ;;  %s782_s17 = scalar_select %p765_p8, 1, 0 }
  0x66   : > { %1035 = vmatprep.subr.bf16.mxu0 %v1173_v1  ;;  %v1179_v10 = vld [vmem:[%s1508_s26 + $0x38] sm:$0xff]   ;;  %v254_v11 = vld [vmem:[#allocation2 + $0x10] sm:$0xff]  ;;  %v256_v13 = vld [vmem:[#allocation2 + $0x20] sm:$0xff]  ;;  %s723_s26 = scalar_select %p674_p6, 1, 0 }
  0x67   : > { %1049 = vmatprep.mubr.bf16.mxu0 %v268_v6  ;;  %v255_v12 = vld [vmem:[#allocation2 + $0x18] sm:$0xff]  ;;  %v257_v14 = vld [vmem:[#allocation2 + $0x28] sm:$0xff]  ;;  %v258_v17 = vld [vmem:[#allocation2 + $0x30] sm:$0xff] }
  0x68   : > { %v269_v15 = vpack.c.bf16 %v255_v12, %v254_v11  ;;  %v270_v16 = vpack.c.bf16 %v257_v14, %v256_v13  ;;  %v259_v18 = vld [vmem:[#allocation2 + $0x38] sm:$0xff]  ;;  %v260_v19 = vld [vmem:[#allocation2 + $0x40] sm:$0xff]  ;;  %v261_v20 = vld [vmem:[#allocation2 + $0x48] sm:$0xff]  ;;  %v783_v13 = vstv %s782_s17 }
  0x69   : > { %1036 = vmatpush3.bf16.msra.mxu0 %v1173_v1  ;;  %v271_v21 = vpack.c.bf16 %v259_v18, %v258_v17  ;;  %v272_v22 = vpack.c.bf16 %v261_v20, %v260_v19  ;;  %v262_v23 = vld [vmem:[#allocation2 + $0x50] sm:$0xff]  ;;  %v263_v24 = vld [vmem:[#allocation2 + $0x58] sm:$0xff]  ;;  %v264_v25 = vld [vmem:[#allocation2 + $0x60] sm:$0xff]  ;;  %vm1613_vm1 = vcmp.eq.s32.totalorder %v783_v13, 1 }
  0x6a   : > { %1037 = vmatprep.subr.bf16.mxu0 %v1174_v2  ;;  %v265_v26 = vld [vmem:[#allocation2 + $0x68] sm:$0xff]  ;;  %v273_v27 = vpack.c.bf16 %v263_v24, %v262_v23  ;;  %v266_v29 = vld [vmem:[#allocation2 + $0x70] sm:$0xff]  ;;  %v267_v30 = vld [vmem:[#allocation2 + $0x78] sm:$0xff] }
  0x6b   : > { %v274_v28 = vpack.c.bf16 %v265_v26, %v264_v25  ;;  %v275_v31 = vpack.c.bf16 %v267_v30, %v266_v29  ;;  %v454_v32 = vld [vmem:[#allocation5] sm:$0xff]  ;;  %v455_v57 = vld [vmem:[#allocation5 + $0x8] sm:$0xff]  ;;  %v456_v58 = vld [vmem:[#allocation5 + $0x10] sm:$0xff] }
  0x6c   : > { %1081 = vmatprep.mubr.bf16.mxu1 %v454_v32  ;;  %v457_v59 = vld [vmem:[#allocation5 + $0x18] sm:$0xff]  ;;  %v458_v60 = vld [vmem:[#allocation5 + $0x20] sm:$0xff]  ;;  %v459_v61 = vld [vmem:[#allocation5 + $0x28] sm:$0xff] }
  0x6d   : > { %1038 = vmatpush3.bf16.msra.mxu0 %v1174_v2  ;;  %v460_v62 = vld [vmem:[#allocation5 + $0x30] sm:$0xff]  ;;  %v461_v63 = vld [vmem:[#allocation5 + $0x38] sm:$0xff]  ;;  %v724_v2 = vstv %s723_s26 }
  0x6e   : > { %1039 = vmatprep.subr.bf16.mxu0 %v1175_v3  ;;  %vm1593_vm0 = vcmp.eq.s32.totalorder %v724_v2, 1 }
  0x71   : > { %1040 = vmatpush3.bf16.msra.mxu0 %v1175_v3 }
  0x72   : > { %1041 = vmatprep.subr.bf16.mxu0 %v1176_v7 }
  0x75   : > { %1042 = vmatpush3.bf16.msra.mxu0 %v1176_v7 }
  0x76   : > { %1043 = vmatprep.subr.bf16.mxu0 %v1177_v8 }
  0x79   : > { %1044 = vmatpush3.bf16.msra.mxu0 %v1177_v8 }
  0x7a   : > { %1045 = vmatprep.subr.bf16.mxu0 %v1178_v9 }
  0x7d   : > { %1046 = vmatpush3.bf16.msra.mxu0 %v1178_v9 }
  0x7e   : > { %1047 = vmatprep.subr.bf16.mxu0 %v1179_v10 }
  0x81   : > { %1048 = vmatpush3.bf16.msra.mxu0 %v1179_v10  ;;  %v1602_v10 = vld [vmem:[%s210_s15] ss:$0 sm:$0xff] }
  0x84   : > { %1050 = vmatmul.mubr.bf16.vlgmr.msra.gmra.mrb[0].mxu0 %v269_v15 }
  0x85   : > { %1053 = vmatprep.mubr.bf16.mxu0 %v270_v16 }
  0x8c   : > { %1054 = vmatmul.mubr.bf16.gmra.mrb[4].mxu0 %v271_v21 }
  0x8d   : > { %1057 = vmatprep.mubr.bf16.mxu0 %v272_v22 }
  0x94   : > { %1058 = vmatmul.mubr.bf16.gmra.mrb[8].mxu0 %v273_v27 }
  0x95   : > { %1061 = vmatprep.mubr.bf16.mxu0 %v274_v28 }
  0x9c   : > { %1062 = vmatmul.mubr.bf16.gmra.mrb[12].mxu0 %v275_v31 }
 0x157   : > { %v1051_v33 = vpop.f32.mrb[0].mxu0 }
 0x158   : > { %v374_v34 = vpop.f32.mrb[1].mxu0 }
 0x159   : > { %v1052_v35 = vpop.f32.mrb[2].mxu0 }
 0x15a   : > { %v1555_v36 = vpack.c.bf16 %v1052_v35, %v1051_v33  ;;  %v377_v37 = vpop.f32.mrb[3].mxu0 }
 0x15b   : > { %v1557_v38 = vpack.c.bf16 %v377_v37, %v374_v34 }
 0x15c   : > { %v660_v0 = vunpack.c.l.bf16 %v1555_v36  ;;  %v661_v3 = vunpack.c.h.bf16 %v1555_v36 }
 0x15d   : > { %1065 = vmatprep.subr.bf16.mxu1 %v1557_v38  ;;  %v658_v1 = vunpack.c.l.bf16 %v1557_v38  ;;  %v659_v4 = vunpack.c.h.bf16 %v1557_v38 }
 0x15e   : > { %1066 = vmatpush3.bf16.msra.mxu1 %v1557_v38  ;;  %v677_v5 = vmul.f32 2.0, %v660_v0  ;;  %v678_v12 = vmul.f32 2.0, %v661_v3 }
 0x15f   : > { %v1055_v39 = vpop.f32.mrb[4].mxu0  ;;  %1067 = vmatprep.subr.bf16.mxu1 %v1555_v36  ;;  %v675_v8 = vmul.f32 2.0, %v658_v1  ;;  %v676_v16 = vmul.f32 2.0, %v659_v4 }
 0x160   : > { %v390_v40 = vpop.f32.mrb[5].mxu0 }
 0x161   : > { %v1056_v41 = vpop.f32.mrb[6].mxu0 }
 0x162   : > { %v1562_v42 = vpack.c.bf16 %v1056_v41, %v1055_v39  ;;  %v393_v43 = vpop.f32.mrb[7].mxu0  ;;  %1068 = vmatpush3.bf16.msra.mxu1 %v1555_v36 }
 0x163   : > { %v1565_v44 = vpack.c.bf16 %v393_v43, %v390_v40 }
 0x164   : > { %v664_v20 = vunpack.c.l.bf16 %v1562_v42  ;;  %v665_v28 = vunpack.c.h.bf16 %v1562_v42 }
 0x165   : > { %1069 = vmatprep.subr.bf16.mxu1 %v1565_v44  ;;  %v662_v24 = vunpack.c.l.bf16 %v1565_v44  ;;  %v663_v32 = vunpack.c.h.bf16 %v1565_v44 }
 0x166   : > { %1070 = vmatpush3.bf16.msra.mxu1 %v1565_v44  ;;  %v681_v35 = vmul.f32 2.0, %v664_v20  ;;  %v682_v44 = vmul.f32 2.0, %v665_v28 }
 0x167   : > { %v1059_v45 = vpop.f32.mrb[8].mxu0  ;;  %1071 = vmatprep.subr.bf16.mxu1 %v1562_v42  ;;  %v679_v39 = vmul.f32 2.0, %v662_v24 }
 0x168   : > { %v406_v46 = vpop.f32.mrb[9].mxu0 }
 0x169   : > { %v1060_v47 = vpop.f32.mrb[10].mxu0 }
 0x16a   : > { %v1570_v48 = vpack.c.bf16 %v1060_v47, %v1059_v45  ;;  %v409_v49 = vpop.f32.mrb[11].mxu0  ;;  %1072 = vmatpush3.bf16.msra.mxu1 %v1562_v42 }
 0x16b   : > { %v1573_v50 = vpack.c.bf16 %v409_v49, %v406_v46  ;;  %v680_v49 = vmul.f32 2.0, %v663_v32 }
 0x16c   : > { %v669_v0 = vunpack.c.h.bf16 %v1570_v48 }
 0x16d   : > { %1073 = vmatprep.subr.bf16.mxu1 %v1573_v50  ;;  %v667_v4 = vunpack.c.h.bf16 %v1573_v50 }
 0x16e   : > { %1074 = vmatpush3.bf16.msra.mxu1 %v1573_v50 }
 0x16f   : > { %v1063_v51 = vpop.f32.mrb[12].mxu0  ;;  %1075 = vmatprep.subr.bf16.mxu1 %v1570_v48  ;;  %v684_v20 = vmul.f32 2.0, %v667_v4 }
 0x170   : > { %v422_v52 = vpop.f32.mrb[13].mxu0 }
 0x171   : > { %v1064_v53 = vpop.f32.mrb[14].mxu0 }
 0x172   : > { %v1578_v54 = vpack.c.bf16 %v1064_v53, %v1063_v51  ;;  %v425_v55 = vpop.f32.mrb[15].mxu0  ;;  %1076 = vmatpush3.bf16.msra.mxu1 %v1570_v48 }
 0x173   : > { %v1581_v56 = vpack.c.bf16 %v425_v55, %v422_v52 }
 0x174   : > { %v672_v28 = vunpack.c.l.bf16 %v1578_v54 }
 0x175   : > { %1077 = vmatprep.subr.bf16.mxu1 %v1581_v56 }
 0x176   : > { %1078 = vmatpush3.bf16.msra.mxu1 %v1581_v56 }
 0x177   : > { %1079 = vmatprep.subr.bf16.mxu1 %v1578_v54 }
 0x17a   : > { %1080 = vmatpush3.bf16.msra.mxu1 %v1578_v54 }
 0x17d   : > { %1082 = vmatmul.mubr.bf16.vlgmr.msra.gmra.mrb[0].mxu1 %v455_v57  ;;  %v668_v57 = vunpack.c.l.bf16 %v1570_v48 }
 0x17e   : > { %1085 = vmatprep.mubr.bf16.mxu1 %v456_v58 }
 0x185   : > { %1086 = vmatmul.mubr.bf16.gmra.mrb[4].mxu1 %v457_v59 }
 0x186   : > { %1089 = vmatprep.mubr.bf16.mxu1 %v458_v60 }
 0x18d   : > { %1090 = vmatmul.mubr.bf16.gmra.mrb[8].mxu1 %v459_v61  ;;  %v666_v61 = vunpack.c.l.bf16 %v1573_v50 }
 0x18e   : > { %1093 = vmatprep.mubr.bf16.mxu1 %v460_v62 }
 0x195   : > { %1094 = vmatmul.mubr.bf16.gmra.mrb[12].mxu1 %v461_v63 }
 0x250   : > { %v1083_v6 = vpop.f32.mrb[0].mxu1 }
 0x251   : > { %v709_v9 = vsub.f32 %v677_v5, %v1083_v6  ;;  %v508_v11 = vpop.f32.mrb[1].mxu1 }
 0x252   : > { %v707_v14 = vsub.f32 %v675_v8, %v508_v11  ;;  %v1084_v15 = vpop.f32.mrb[2].mxu1  ;;  %v685_v8 = vmul.f32 2.0, %v668_v57 }
 0x253   : > { %v728_v17 = vsel %vm1593_vm0, %v709_v9, %v1083_v6  ;;  %v710_v18 = vsub.f32 %v678_v12, %v1084_v15  ;;  %v511_v19 = vpop.f32.mrb[3].mxu1  ;;  %v683_v12 = vmul.f32 2.0, %v666_v61 }
 0x254   : > { %v1608_v21 = vadd.f32 %v1602_v10, %v728_v17  ;;  %v726_v22 = vsel %vm1593_vm0, %v707_v14, %v508_v11  ;;  %v708_v23 = vsub.f32 %v676_v16, %v511_v19  ;;  %v686_v16 = vmul.f32 2.0, %v669_v0 }
 0x255   : > { %v1618_v26 = vadd.f32 %v1602_v10, %v726_v22  ;;  %v729_v27 = vsel %vm1593_vm0, %v710_v18, %v1084_v15 }
 0x256   : > { %v768_v29 = vmax.f32 %v1608_v21, 0.0  ;;  %v1625_v30 = vadd.f32 %v1602_v10, %v729_v27  ;;  %v727_v31 = vsel %vm1593_vm0, %v708_v23, %v511_v19 }
 0x257   : > { %v766_v33 = vmax.f32 %v1618_v26, 0.0  ;;  %v1632_v34 = vadd.f32 %v1602_v10, %v727_v31 }
 0x258   : > { %v1637_v36 = vsel %vm1613_vm1, %v1608_v21, %v768_v29  ;;  %v769_v37 = vmax.f32 %v1625_v30, 0.0  ;;  %v1087_v38 = vpop.f32.mrb[4].mxu1 }
 0x259   : > { %804 = vst [vmem:[#allocation2 + $0x10] sm:$0xff] %v1637_v36  ;;  %v1644_v40 = vsel %vm1613_vm1, %v1618_v26, %v766_v33  ;;  %v767_v41 = vmax.f32 %v1632_v34, 0.0  ;;  %v713_v42 = vsub.f32 %v681_v35, %v1087_v38  ;;  %v524_v43 = vpop.f32.mrb[5].mxu1  ;;  %v670_v33 = vunpack.c.l.bf16 %v1581_v56  ;;  %825 = vst [vmem:[#allocation10 + $0x10] sm:$0xff] (!%p991_p10), %v1637_v36 }
 0x25a   : > { %802 = vst [vmem:[#allocation2] sm:$0xff] %v1644_v40  ;;  %v1651_v45 = vsel %vm1613_vm1, %v1625_v30, %v769_v37  ;;  %v711_v46 = vsub.f32 %v679_v39, %v524_v43  ;;  %v1088_v47 = vpop.f32.mrb[6].mxu1  ;;  %823 = vst [vmem:[#allocation10] sm:$0xff] (!%p991_p10), %v1644_v40 }
 0x25b   : > { %805 = vst [vmem:[#allocation2 + $0x18] sm:$0xff] %v1651_v45  ;;  %v1657_v51 = vsel %vm1613_vm1, %v1632_v34, %v767_v41  ;;  %v732_v52 = vsel %vm1593_vm0, %v713_v42, %v1087_v38  ;;  %v714_v53 = vsub.f32 %v682_v44, %v1088_v47  ;;  %v527_v55 = vpop.f32.mrb[7].mxu1  ;;  %v673_v38 = vunpack.c.h.bf16 %v1578_v54  ;;  %826 = vst [vmem:[#allocation10 + $0x18] sm:$0xff] (!%p991_p10), %v1651_v45 }
 0x25c   : > { %803 = vst [vmem:[#allocation2 + $0x8] sm:$0xff] %v1657_v51  ;;  %v1664_v58 = vadd.f32 %v1602_v10, %v732_v52  ;;  %v730_v59 = vsel %vm1593_vm0, %v711_v46, %v524_v43  ;;  %v712_v60 = vsub.f32 %v680_v49, %v527_v55  ;;  %v671_v43 = vunpack.c.h.bf16 %v1581_v56  ;;  %824 = vst [vmem:[#allocation10 + $0x8] sm:$0xff] (!%p991_p10), %v1657_v51 }
 0x25d   : > { %v1670_v62 = vadd.f32 %v1602_v10, %v730_v59  ;;  %v733_v63 = vsel %vm1593_vm0, %v714_v53, %v1088_v47  ;;  %v689_v47 = vmul.f32 2.0, %v672_v28  ;;  %v687_v53 = vmul.f32 2.0, %v670_v33 }
 0x25e   : > { %v772_v1 = vmax.f32 %v1664_v58, 0.0  ;;  %v1677_v2 = vadd.f32 %v1602_v10, %v733_v63  ;;  %v731_v3 = vsel %vm1593_vm0, %v712_v60, %v527_v55  ;;  %v690_v60 = vmul.f32 2.0, %v673_v38 }
 0x25f   : > { %v770_v5 = vmax.f32 %v1670_v62, 0.0  ;;  %v1684_v6 = vadd.f32 %v1602_v10, %v731_v3 }
 0x260   : > { %v1689_v48 = vsel %vm1613_vm1, %v1664_v58, %v772_v1  ;;  %v773_v9 = vmax.f32 %v1677_v2, 0.0  ;;  %v1091_v11 = vpop.f32.mrb[8].mxu1  ;;  %v688_v1 = vmul.f32 2.0, %v671_v43 }
 0x261   : > { %808 = vst [vmem:[#allocation2 + $0x30] sm:$0xff] %v1689_v48  ;;  %v1696_v50 = vsel %vm1613_vm1, %v1670_v62, %v770_v5  ;;  %v771_v13 = vmax.f32 %v1684_v6, 0.0  ;;  %v717_v14 = vsub.f32 %v685_v8, %v1091_v11  ;;  %v540_v15 = vpop.f32.mrb[9].mxu1  ;;  %829 = vst [vmem:[#allocation10 + $0x30] sm:$0xff] (!%p991_p10), %v1689_v48 }
 0x262   : > { %806 = vst [vmem:[#allocation2 + $0x20] sm:$0xff] %v1696_v50  ;;  %v1703_v17 = vsel %vm1613_vm1, %v1677_v2, %v773_v9  ;;  %v715_v18 = vsub.f32 %v683_v12, %v540_v15  ;;  %v1092_v19 = vpop.f32.mrb[10].mxu1  ;;  %827 = vst [vmem:[#allocation10 + $0x20] sm:$0xff] (!%p991_p10), %v1696_v50 }
 0x263   : > { %809 = vst [vmem:[#allocation2 + $0x38] sm:$0xff] %v1703_v17  ;;  %v1709_v22 = vsel %vm1613_vm1, %v1684_v6, %v771_v13  ;;  %v736_v23 = vsel %vm1593_vm0, %v717_v14, %v1091_v11  ;;  %v718_v24 = vsub.f32 %v686_v16, %v1092_v19  ;;  %v543_v27 = vpop.f32.mrb[11].mxu1  ;;  %830 = vst [vmem:[#allocation10 + $0x38] sm:$0xff] (!%p991_p10), %v1703_v17 }
 0x264   : > { %807 = vst [vmem:[#allocation2 + $0x28] sm:$0xff] %v1709_v22  ;;  %v1716_v29 = vadd.f32 %v1602_v10, %v736_v23  ;;  %v734_v31 = vsel %vm1593_vm0, %v715_v18, %v540_v15  ;;  %v716_v32 = vsub.f32 %v684_v20, %v543_v27  ;;  %828 = vst [vmem:[#allocation10 + $0x28] sm:$0xff] (!%p991_p10), %v1709_v22 }
 0x265   : > { %v1722_v35 = vadd.f32 %v1602_v10, %v734_v31  ;;  %v737_v37 = vsel %vm1593_vm0, %v718_v24, %v1092_v19 }
 0x266   : > { %v776_v39 = vmax.f32 %v1716_v29, 0.0  ;;  %v1729_v41 = vadd.f32 %v1602_v10, %v737_v37  ;;  %v735_v42 = vsel %vm1593_vm0, %v716_v32, %v543_v27 }
 0x267   : > { %v774_v44 = vmax.f32 %v1722_v35, 0.0  ;;  %v1736_v46 = vadd.f32 %v1602_v10, %v735_v42 }
 0x268   : > { %v795_v54 = vsel %vm1613_vm1, %v1716_v29, %v776_v39  ;;  %v777_v49 = vmax.f32 %v1729_v41, 0.0  ;;  %v1095_v52 = vpop.f32.mrb[12].mxu1 }
 0x269   : > { %812 = vst [vmem:[#allocation2 + $0x50] sm:$0xff] %v795_v54  ;;  %v793_v55 = vsel %vm1613_vm1, %v1722_v35, %v774_v44  ;;  %v775_v56 = vmax.f32 %v1736_v46, 0.0  ;;  %v721_v57 = vsub.f32 %v689_v47, %v1095_v52  ;;  %v556_v59 = vpop.f32.mrb[13].mxu1  ;;  %833 = vst [vmem:[#allocation10 + $0x50] sm:$0xff] (!%p991_p10), %v795_v54 }
 0x26a   : > { %810 = vst [vmem:[#allocation2 + $0x40] sm:$0xff] %v793_v55  ;;  %v796_v61 = vsel %vm1613_vm1, %v1729_v41, %v777_v49  ;;  %v719_v63 = vsub.f32 %v687_v53, %v556_v59  ;;  %v1096_v0 = vpop.f32.mrb[14].mxu1  ;;  %831 = vst [vmem:[#allocation10 + $0x40] sm:$0xff] (!%p991_p10), %v793_v55 }
 0x26b   : > { %813 = vst [vmem:[#allocation2 + $0x58] sm:$0xff] %v796_v61  ;;  %v794_v3 = vsel %vm1613_vm1, %v1736_v46, %v775_v56  ;;  %v740_v4 = vsel %vm1593_vm0, %v721_v57, %v1095_v52  ;;  %v722_v5 = vsub.f32 %v690_v60, %v1096_v0  ;;  %v559_v8 = vpop.f32.mrb[15].mxu1  ;;  %834 = vst [vmem:[#allocation10 + $0x58] sm:$0xff] (!%p991_p10), %v796_v61 }
 0x26c   : > { %811 = vst [vmem:[#allocation2 + $0x48] sm:$0xff] %v794_v3  ;;  %v763_v9 = vadd.f32 %v1602_v10, %v740_v4  ;;  %v738_v11 = vsel %vm1593_vm0, %v719_v63, %v556_v59  ;;  %v720_v12 = vsub.f32 %v688_v1, %v559_v8  ;;  %832 = vst [vmem:[#allocation10 + $0x48] sm:$0xff] (!%p991_p10), %v794_v3 }
 0x26d   : > { %v761_v13 = vadd.f32 %v1602_v10, %v738_v11  ;;  %v741_v14 = vsel %vm1593_vm0, %v722_v5, %v1096_v0 }
 0x26e   : > { %v780_v15 = vmax.f32 %v763_v9, 0.0  ;;  %v764_v16 = vadd.f32 %v1602_v10, %v741_v14  ;;  %v739_v18 = vsel %vm1593_vm0, %v720_v12, %v559_v8  ;;  %821 = sbr.rel (%p991_p10) target bundleno = 629 (0x275), region = 66 }
 0x26f   : > { %v778_v19 = vmax.f32 %v761_v13, 0.0  ;;  %v762_v20 = vadd.f32 %v1602_v10, %v739_v18 }
 0x270   : > { %v799_v23 = vsel %vm1613_vm1, %v763_v9, %v780_v15  ;;  %v781_v24 = vmax.f32 %v764_v16, 0.0 }
 0x271   : > { %816 = vst [vmem:[#allocation2 + $0x70] sm:$0xff] %v799_v23  ;;  %v797_v27 = vsel %vm1613_vm1, %v761_v13, %v778_v19  ;;  %v779_v28 = vmax.f32 %v762_v20, 0.0  ;;  %837 = vst [vmem:[#allocation10 + $0x70] sm:$0xff] (!%p991_p10), %v799_v23 }
 0x272   : > { %814 = vst [vmem:[#allocation2 + $0x60] sm:$0xff] %v797_v27  ;;  %v800_v31 = vsel %vm1613_vm1, %v764_v16, %v781_v24  ;;  %835 = vst [vmem:[#allocation10 + $0x60] sm:$0xff] (!%p991_p10), %v797_v27 }
 0x273   : > { %817 = vst [vmem:[#allocation2 + $0x78] sm:$0xff] %v800_v31  ;;  %v798_v7 = vsel %vm1613_vm1, %v762_v20, %v779_v28  ;;  %838 = vst [vmem:[#allocation10 + $0x78] sm:$0xff] (!%p991_p10), %v800_v31 }
 0x274   : > { %815 = vst [vmem:[#allocation2 + $0x68] sm:$0xff] %v798_v7  ;;  %836 = vst [vmem:[#allocation10 + $0x68] sm:$0xff] (!%p991_p10), %v798_v7 }
 0x275 PF: > { %p992_p12 = scmp.ne.s32.totalorder %s1360_s21, 5 }
 0x276   : > { %843 = vst [vmem:[#allocation9] sm:$0xff] (!%p992_p12), %v1618_v26  ;;  %844 = vst [vmem:[#allocation9 + $0x8] sm:$0xff] (!%p992_p12), %v1632_v34 }
 0x277   : > { %841 = sbr.rel (%p992_p12) target bundleno = 638 (0x27e), region = 70  ;;  %845 = vst [vmem:[#allocation9 + $0x10] sm:$0xff] (!%p992_p12), %v1608_v21  ;;  %846 = vst [vmem:[#allocation9 + $0x18] sm:$0xff] (!%p992_p12), %v1625_v30 }
 0x278   : > { %847 = vst [vmem:[#allocation9 + $0x20] sm:$0xff] (!%p992_p12), %v1670_v62  ;;  %848 = vst [vmem:[#allocation9 + $0x28] sm:$0xff] (!%p992_p12), %v1684_v6 }
 0x279   : > { %849 = vst [vmem:[#allocation9 + $0x30] sm:$0xff] (!%p992_p12), %v1664_v58  ;;  %850 = vst [vmem:[#allocation9 + $0x38] sm:$0xff] (!%p992_p12), %v1677_v2 }
 0x27a   : > { %851 = vst [vmem:[#allocation9 + $0x40] sm:$0xff] (!%p992_p12), %v1722_v35  ;;  %852 = vst [vmem:[#allocation9 + $0x48] sm:$0xff] (!%p992_p12), %v1736_v46 }
 0x27b   : > { %853 = vst [vmem:[#allocation9 + $0x50] sm:$0xff] (!%p992_p12), %v1716_v29  ;;  %854 = vst [vmem:[#allocation9 + $0x58] sm:$0xff] (!%p992_p12), %v1729_v41 }
 0x27c   : > { %855 = vst [vmem:[#allocation9 + $0x60] sm:$0xff] (!%p992_p12), %v761_v13  ;;  %856 = vst [vmem:[#allocation9 + $0x68] sm:$0xff] (!%p992_p12), %v762_v20 }
 0x27d   : > { %857 = vst [vmem:[#allocation9 + $0x70] sm:$0xff] (!%p992_p12), %v763_v9  ;;  %858 = vst [vmem:[#allocation9 + $0x78] sm:$0xff] (!%p992_p12), %v764_v16 }
 0x27e PF: > { %p1796_p0 = scmp.eq.s32.totalorder %s973_s24, 5  ;;  %s1375_s11 = smov [#allocation9]  }
 0x27f   : > { %s865_s15 = sshll.u32 %s1375_s11, 4  ;;  %s866_s15 = int_to_ptr.vmem [resolvable:$true] %s865_s15 }
 0x280   : > { %s1254_s14 = scalar_lea.vmem %s866_s15, 2048  ;;  %p1261_p13 = scmp.lt.s32.totalorder %s866_s15, %s866_s15 }
 0x281   : > { %p1255_p1 = scmp.ne.s32.totalorder %s866_s15, %s1254_s14  ;;  %p1262_p3 = scmp.lt.s32.totalorder %s1254_s14, %s1254_s14 }
 0x283   : > { %p1256_p2 = pnand %p1255_p1, %p1796_p0  ;;  %p1263_p9 = por %p1262_p3, %p1261_p13 }
 0x285   : > { %p1257_p11 = pneg %p1256_p2 }
 0x287   : > { %p1264_p4 = pnand %p1263_p9, %p1257_p11 }
 0x289   : > { %1267 = shalt.err (!%p1264_p4)
}
 0x28a   : > { %s1268_s24 = scalar_lea.hbm %s1866_s4, 2048 }
 0x28b   : > { %p1269_p7 = scmp.ne.s32.totalorder %s1866_s4, %s1268_s24  ;;  %p1274_p8 = scmp.lt.u32.totalorder %s1268_s24, %s1866_s4 }
 0x28d   : > { %p1270_p5 = pnand %p1269_p7, %p1796_p0 }
 0x28f   : > { %p1271_p6 = pneg %p1270_p5 }
 0x291   : > { %p1276_p10 = pnand %p1274_p8, %p1271_p6 }
 0x293   : > { %1279 = shalt.err (!%p1276_p10)
}
 0x294   : > { %s1376_s10 = smov 128   ;;  %s1377_s28 = smov 8  }
 0x295   : > { %1100 = dma.vmem_to_hbm [thread:$0]  (%p1796_p0), %s866_s15, 2048, %s1866_s4, [#allocation8], %s1376_s10, %s1376_s10, %s1377_s28  }
 0x296   : > { %s1378_s26 = smov [#allocation10]  }
 0x297   : > { %s878_s17 = sshll.u32 %s1378_s26, 4  ;;  %s879_s17 = int_to_ptr.vmem [resolvable:$true] %s878_s17 }
 0x298   : > { %s1280_s18 = scalar_lea.vmem %s879_s17, 2048  ;;  %p1287_p11 = scmp.lt.s32.totalorder %s879_s17, %s879_s17 }
 0x299   : > { %p1281_p12 = scmp.ne.s32.totalorder %s879_s17, %s1280_s18  ;;  %p1288_p13 = scmp.lt.s32.totalorder %s1280_s18, %s1280_s18 }
 0x29b   : > { %p1282_p1 = pnand %p1281_p12, %p1796_p0  ;;  %p1289_p3 = por %p1288_p13, %p1287_p11 }
 0x29d   : > { %p1283_p2 = pneg %p1282_p1 }
 0x29f   : > { %p1290_p9 = pnand %p1289_p3, %p1283_p2 }
 0x2a1   : > { %1293 = shalt.err (!%p1290_p9)
}
 0x2a2   : > { %s1294_s14 = scalar_lea.hbm %s1867_s5, 2048 }
 0x2a3   : > { %p1295_p4 = scmp.ne.s32.totalorder %s1867_s5, %s1294_s14  ;;  %p1300_p6 = scmp.lt.u32.totalorder %s1294_s14, %s1867_s5 }
 0x2a5   : > { %p1296_p7 = pnand %p1295_p4, %p1796_p0 }
 0x2a7   : > { %p1297_p5 = pneg %p1296_p7 }
 0x2a9   : > { %p1302_p8 = pnand %p1300_p6, %p1297_p5 }
 0x2ab   : > { %1305 = shalt.err (!%p1302_p8)
}
 0x2ac   : > { %1102 = dma.vmem_to_hbm [thread:$0]  (%p1796_p0), %s879_s17, 2048, %s1867_s5, [#allocation11], %s1376_s10, %s1376_s10, %s1377_s28  }
 0x2ad   : > { %1339 = dma.done.wait (%p1796_p0), [#allocation8], 2048  }
 0x2ae   : > { %1341 = vsyncadd (%p1796_p0), [#allocation8], 4294965248 }
 0x2af   : > { %1343 = dma.done.wait (%p1796_p0), [#allocation11], 2048  }
 0x2b0   : > { %1345 = vsyncadd (%p1796_p0), [#allocation11], 4294965248 }
 0x2b1 PF: > { %s21_s23 = sadd.s32 1, %s1368_s23   ;;  %s1876_s18 = smov %s1352_s19 }
 0x2b2   : > { %p18_p10 = scmp.ge.s32.totalorder %s21_s23, 8   ;;  %s1877_s19 = smov %s1356_s20 }
 0x2b3   : > { %s1878_s20 = smov %s1460_s30  ;;  %s1879_s21 = smov %s1364_s22 }
 0x2b4   : > { %s1880_s22 = smov %s1882_s25  ;;  %20 = sbr.rel (!%p18_p10) target bundleno = 6 (0x6), region = 119 }
 0x2bb   :  { %898 = vsyncpa [#allocation7], 1 }
 0x2bc   :  { %900 = vsyncpa [#allocation7 + $0x1], 1 }
 0x2bd   :  { %901 = vsyncpa [#allocation8], 1 }
 0x2be   :  { %903 = vsyncpa [#allocation8 + $0x1], 1 }
 0x2bf   :  { %904 = vsyncpa [#allocation11], 1 }

</bundles_post_ra>
